<compile_context>
chip_gen: v7x
topology: tpu7x:2x2x1
jax: 0.10.0
libtpu: 0.0.40
codegen_flags: <defaults>
</compile_context>

<pallas_src>
import functools
import math

import jax
import jax.numpy as jnp
from jax.experimental import pallas as pl
from jax.experimental.pallas import tpu as pltpu

LANE = 128
SUBLANE = 8


def _round_up(x, m):
    return (x + m - 1) // m * m


def _fused_lipmlp_kernel(x_ref, w0_ref, w_ref, b_ref, o_ref, *, n_layers, out_rows):
    """One batch tile through every layer; activations never leave VMEM/vregs.

    x_ref : (in_dim, TB)    feature-major input tile (batch on the lane axis)
    w0_ref: (F, in_dim)     layer-0 weight, Lipschitz scale pre-folded
    w_ref : (L-1, F, F)     layers 1..L-1 weights, scale pre-folded, zero-padded
    b_ref : (L, F, 1)       per-layer bias columns, zero-padded
    o_ref : (out_rows, TB)  output tile (lane-dense: TB is a multiple of 128)
    """
    cdt = w0_ref.dtype
    h = jnp.dot(w0_ref[...], x_ref[...].astype(cdt),
                preferred_element_type=jnp.float32) + b_ref[0]
    # Static unroll is fine for the small layer counts typical of lipmlp; for deep
    # nets (L >~ 16) switch to lax.fori_loop over w_ref/b_ref with pl.ds indexing.
    for l in range(1, n_layers):
        h = jnp.maximum(h, 0.0)                              # ReLU on hidden layers only
        h = jnp.dot(w_ref[l - 1], h.astype(cdt),
                    preferred_element_type=jnp.float32) + b_ref[l]
    o_ref[...] = h[:out_rows, :].astype(o_ref.dtype)


def _lipschitz_scaled(w, c):
    """W * clamp(softplus(c) / clamp(|W|.sum(in), min=1e-6), max=1)[:, None]."""
    lipc = jax.nn.softplus(c.reshape(()))
    scale = jnp.minimum(lipc / jnp.maximum(jnp.sum(jnp.abs(w), axis=1), 1e-6), 1.0)
    return w * scale[:, None]


def prepare_lipmlp_params(params, matmul_dtype=jnp.float32):
    """Fold the Lipschitz scale into the (tiny, grid-invariant) weights once in the
    wrapper, zero-pad feature dims to a common sublane-aligned width F, stack layers."""
    n_layers = len(params)
    in_dim = params[0][0].shape[1]
    F = _round_up(max(w.shape[0] for w, _, _ in params), SUBLANE)

    w0, b0, c0 = params[0]
    w0_p = (jnp.zeros((F, in_dim), jnp.float32)
            .at[: w0.shape[0], :].set(_lipschitz_scaled(w0.astype(jnp.float32), c0))
            .astype(matmul_dtype))
    w_rest = jnp.zeros((n_layers - 1, F, F), jnp.float32)
    b_stack = jnp.zeros((n_layers, F, 1), jnp.float32)
    b_stack = b_stack.at[0, : b0.shape[0], 0].set(b0.astype(jnp.float32))
    for l in range(1, n_layers):
        w, b, c = params[l]
        out_f, in_f = w.shape
        w_rest = w_rest.at[l - 1, :out_f, :in_f].set(
            _lipschitz_scaled(w.astype(jnp.float32), c))
        b_stack = b_stack.at[l, :out_f, 0].set(b.astype(jnp.float32))
    return w0_p, w_rest.astype(matmul_dtype), b_stack, F


def lipmlp_forward(x, params, *, batch_tile=2048, matmul_dtype=jnp.float32):
    """Fused lipmlp forward: hidden LipschitzLinear+ReLU layers, LipschitzLinear output."""
    n_layers = len(params)
    in_dim = params[0][0].shape[1]
    out_dim = params[-1][0].shape[0]
    B = x.shape[0]
    O8 = _round_up(out_dim, SUBLANE)

    w0_p, w_rest, b_stack, F = prepare_lipmlp_params(params, matmul_dtype)

    # Feature-major: batch on lanes; tile the batch with a "parallel" grid axis.
    TB = min(batch_tile, _round_up(B, LANE))
    B_pad = _round_up(B, TB)
    x_fm = x.astype(jnp.float32).T                           # (in_dim, B)
    if B_pad != B:
        x_fm = jnp.pad(x_fm, ((0, 0), (0, B_pad - B)))

    kernel = functools.partial(_fused_lipmlp_kernel, n_layers=n_layers, out_rows=O8)
    resident = dict(pipeline_mode=pl.Buffered(1))            # grid-invariant: single buffer
    out_fm = pl.pallas_call(
        kernel,
        out_shape=jax.ShapeDtypeStruct((O8, B_pad), jnp.float32),
        grid_spec=pltpu.PrefetchScalarGridSpec(
            num_scalar_prefetch=0,
            grid=(B_pad // TB,),
            in_specs=[
                pl.BlockSpec((in_dim, TB), lambda i: (0, i)),                      # x tile
                pl.BlockSpec((F, in_dim), lambda i: (0, 0), **resident),           # W0
                pl.BlockSpec((n_layers - 1, F, F), lambda i: (0, 0, 0), **resident),  # W1..
                pl.BlockSpec((n_layers, F, 1), lambda i: (0, 0, 0), **resident),   # biases
            ],
            out_specs=pl.BlockSpec((O8, TB), lambda i: (0, i)),
        ),
        compiler_params=pltpu.CompilerParams(
            dimension_semantics=("parallel",),               # batch tiles shard on v7x's 2 TCs
            vmem_limit_bytes=48 * 1024 * 1024,               # > v5e/v6e defaults, < v7x 64 MiB
        ),
    )(x_fm, w0_p, w_rest, b_stack)
    return out_fm[:out_dim, :B].T


def init_lipmlp_params(dims, key):
    """Deterministic init mirroring LipschitzLinear.initialize_parameters."""
    params = []
    n_layers = len(dims) - 1
    for ii in range(n_layers):
        in_f, out_f = dims[ii], dims[ii + 1]
        key, kw, kb = jax.random.split(key, 3)
        stdv = 1.0 / math.sqrt(in_f)
        w = jax.random.uniform(kw, (out_f, in_f), jnp.float32, -stdv, stdv)
        b = jax.random.uniform(kb, (out_f,), jnp.float32, -stdv, stdv)
        if ii == n_layers - 1:
            c = jnp.max(jnp.sum(jnp.abs(w), axis=1)).reshape(1)   # init='abs_row_sum'
        else:
            c = jnp.ones((1,), jnp.float32)                       # init='one'
        params.append((w, b, c))
    return params


def lipmlp_reference(x, params):
    """Pure-JAX reference matching the PyTorch module (use_bn=False)."""
    n = len(params)
    h = x.astype(jnp.float32)
    for ii, (w, b, c) in enumerate(params):
        lipc = jax.nn.softplus(c.reshape(()))
        scale = jnp.minimum(lipc / jnp.maximum(jnp.sum(jnp.abs(w), axis=1), 1e-6), 1.0)
        h = h @ (w * scale[:, None]).T + b
        if ii < n - 1:
            h = jnp.maximum(h, 0.0)
    return h


if __name__ == "__main__":
    # dims[0]=input dim, dims[1:-1]=hidden dims, dims[-1]=output dim (len >= 3)
    dims = [4, 32, 32, 8]
    batch = 8

    key = jax.random.PRNGKey(0)
    key, kx = jax.random.split(key)
    x = jax.random.normal(kx, (batch, dims[0]), jnp.float32)
    params = init_lipmlp_params(dims, key)

    fwd = jax.jit(lipmlp_forward)
    out = jax.block_until_ready(fwd(x, params))
    assert out.shape == (batch, dims[-1]), out.shape
    assert bool(jnp.all(jnp.isfinite(out)))
    ref = lipmlp_reference(x, params)
    assert jnp.allclose(out, ref, atol=1e-5, rtol=1e-5), float(jnp.max(jnp.abs(out - ref)))

    # Multi-tile grid path (batch split across the "parallel" axis, padded rows dropped).
    key, kx2 = jax.random.split(key)
    x2 = jax.random.normal(kx2, (300, dims[0]), jnp.float32)
    fwd_tiled = jax.jit(functools.partial(lipmlp_forward, batch_tile=128))
    out2 = jax.block_until_ready(fwd_tiled(x2, params))
    ref2 = lipmlp_reference(x2, params)
    assert out2.shape == (300, dims[-1]), out2.shape
    assert jnp.allclose(out2, ref2, atol=1e-5, rtol=1e-5), float(jnp.max(jnp.abs(out2 - ref2)))

    print("KERNEL_OK")
</pallas_src>

<mosaic_0001>
module attributes {stable_mosaic.version = 11 : i64} {
  func.func @_fused_lipmlp_kernel(%arg0: i32, %arg1: memref<4x128xf32, #tpu.memory_space<vmem>>, %arg2: memref<32x4xf32, #tpu.memory_space<vmem>>, %arg3: memref<2x32x32xf32, #tpu.memory_space<vmem>>, %arg4: memref<3x32x1xf32, #tpu.memory_space<vmem>>, %arg5: memref<8x128xf32, #tpu.memory_space<vmem>>) attributes {dimension_semantics = [#tpu.dimension_semantics<parallel>], iteration_bounds = array<i64: 1>, scalar_prefetch = 0 : i64, scratch_operands = 0 : i64, tpu.core_type = #tpu.core_type<tc>, window_params = [{transform_indices = @transform_0, window_bounds = array<i64: 4, 128>}, {pipeline_mode = #tpu.pipeline_mode<synchronous>, transform_indices = @transform_1, window_bounds = array<i64: 32, 4>}, {pipeline_mode = #tpu.pipeline_mode<synchronous>, transform_indices = @transform_2, window_bounds = array<i64: 2, 32, 32>}, {pipeline_mode = #tpu.pipeline_mode<synchronous>, transform_indices = @transform_3, window_bounds = array<i64: 3, 32, 1>}, {transform_indices = @transform_4, window_bounds = array<i64: 8, 128>}]} {
    %c0 = arith.constant 0 : index
    %c0_0 = arith.constant 0 : index
    %0 = vector.load %arg2[%c0, %c0_0] : memref<32x4xf32, #tpu.memory_space<vmem>>, vector<32x4xf32>
    %c0_1 = arith.constant 0 : index
    %c0_2 = arith.constant 0 : index
    %1 = vector.load %arg1[%c0_1, %c0_2] : memref<4x128xf32, #tpu.memory_space<vmem>>, vector<4x128xf32>
    %cst = arith.constant dense<0.000000e+00> : vector<32x128xf32>
    %2 = tpu.matmul %0, %1, %cst {dimension_numbers = #tpu.dot_dimension_numbers<[1], [0], [0], [1], [0, 0, 1, 1], [], []>} : vector<32x4xf32>, vector<4x128xf32>, vector<32x128xf32> -> vector<32x128xf32>
    %c0_3 = arith.constant 0 : index
    %c0_4 = arith.constant 0 : index
    %c0_5 = arith.constant 0 : index
    %3 = vector.load %arg4[%c0_3, %c0_4, %c0_5] : memref<3x32x1xf32, #tpu.memory_space<vmem>>, vector<1x32x1xf32>
    %4 = vector.shape_cast %3 : vector<1x32x1xf32> to vector<32x1xf32>
    %5 = vector.broadcast %4 : vector<32x1xf32> to vector<32x128xf32>
    %6 = arith.addf %2, %5 : vector<32x128xf32>
    %cst_6 = arith.constant 0.000000e+00 : f32
    %7 = vector.broadcast %cst_6 : f32 to vector<32x128xf32>
    %8 = arith.maximumf %6, %7 : vector<32x128xf32>
    %c0_7 = arith.constant 0 : index
    %c0_8 = arith.constant 0 : index
    %c0_9 = arith.constant 0 : index
    %9 = vector.load %arg3[%c0_7, %c0_8, %c0_9] : memref<2x32x32xf32, #tpu.memory_space<vmem>>, vector<1x32x32xf32>
    %10 = vector.shape_cast %9 : vector<1x32x32xf32> to vector<32x32xf32>
    %cst_10 = arith.constant dense<0.000000e+00> : vector<32x128xf32>
    %11 = tpu.matmul %10, %8, %cst_10 {dimension_numbers = #tpu.dot_dimension_numbers<[1], [0], [0], [1], [0, 0, 1, 1], [], []>} : vector<32x32xf32>, vector<32x128xf32>, vector<32x128xf32> -> vector<32x128xf32>
    %c1 = arith.constant 1 : index
    %c0_11 = arith.constant 0 : index
    %c0_12 = arith.constant 0 : index
    %12 = vector.load %arg4[%c1, %c0_11, %c0_12] : memref<3x32x1xf32, #tpu.memory_space<vmem>>, vector<1x32x1xf32>
    %13 = vector.shape_cast %12 : vector<1x32x1xf32> to vector<32x1xf32>
    %14 = vector.broadcast %13 : vector<32x1xf32> to vector<32x128xf32>
    %15 = arith.addf %11, %14 : vector<32x128xf32>
    %cst_13 = arith.constant 0.000000e+00 : f32
    %16 = vector.broadcast %cst_13 : f32 to vector<32x128xf32>
    %17 = arith.maximumf %15, %16 : vector<32x128xf32>
    %c1_14 = arith.constant 1 : index
    %c0_15 = arith.constant 0 : index
    %c0_16 = arith.constant 0 : index
    %18 = vector.load %arg3[%c1_14, %c0_15, %c0_16] : memref<2x32x32xf32, #tpu.memory_space<vmem>>, vector<1x32x32xf32>
    %19 = vector.shape_cast %18 : vector<1x32x32xf32> to vector<32x32xf32>
    %cst_17 = arith.constant dense<0.000000e+00> : vector<32x128xf32>
    %20 = tpu.matmul %19, %17, %cst_17 {dimension_numbers = #tpu.dot_dimension_numbers<[1], [0], [0], [1], [0, 0, 1, 1], [], []>} : vector<32x32xf32>, vector<32x128xf32>, vector<32x128xf32> -> vector<32x128xf32>
    %c2 = arith.constant 2 : index
    %c0_18 = arith.constant 0 : index
    %c0_19 = arith.constant 0 : index
    %21 = vector.load %arg4[%c2, %c0_18, %c0_19] : memref<3x32x1xf32, #tpu.memory_space<vmem>>, vector<1x32x1xf32>
    %22 = vector.shape_cast %21 : vector<1x32x1xf32> to vector<32x1xf32>
    %23 = vector.broadcast %22 : vector<32x1xf32> to vector<32x128xf32>
    %24 = arith.addf %20, %23 : vector<32x128xf32>
    %25 = vector.extract_strided_slice %24 {offsets = [0, 0], sizes = [8, 128], strides = [1, 1]} : vector<32x128xf32> to vector<8x128xf32>
    %c0_20 = arith.constant 0 : index
    %c0_21 = arith.constant 0 : index
    %26 = vector.load %arg5[%c0_20, %c0_21] : memref<8x128xf32, #tpu.memory_space<vmem>>, vector<8x128xf32>
    tpu.vector_store %arg5[%c0_20, %c0_21], %25 {strides = array<i32>} : memref<8x128xf32, #tpu.memory_space<vmem>>, vector<8x128xf32>,
    return
  }
  func.func @transform_0(%arg0: i32) -> (i32, i32) {
    %c0_i32 = arith.constant 0 : i32
    %c0_i32_0 = arith.constant 0 : i32
    return %c0_i32, %arg0 : i32, i32
  }
  func.func @transform_1(%arg0: i32) -> (i32, i32) {
    %c0_i32 = arith.constant 0 : i32
    %c0_i32_0 = arith.constant 0 : i32
    %c0_i32_1 = arith.constant 0 : i32
    return %c0_i32, %c0_i32_0 : i32, i32
  }
  func.func @transform_2(%arg0: i32) -> (i32, i32, i32) {
    %c0_i32 = arith.constant 0 : i32
    %c0_i32_0 = arith.constant 0 : i32
    %c0_i32_1 = arith.constant 0 : i32
    %c0_i32_2 = arith.constant 0 : i32
    return %c0_i32, %c0_i32_0, %c0_i32_1 : i32, i32, i32
  }
  func.func @transform_3(%arg0: i32) -> (i32, i32, i32) {
    %c0_i32 = arith.constant 0 : i32
    %c0_i32_0 = arith.constant 0 : i32
    %c0_i32_1 = arith.constant 0 : i32
    %c0_i32_2 = arith.constant 0 : i32
    return %c0_i32, %c0_i32_0, %c0_i32_1 : i32, i32, i32
  }
  func.func @transform_4(%arg0: i32) -> (i32, i32) {
    %c0_i32 = arith.constant 0 : i32
    %c0_i32_0 = arith.constant 0 : i32
    return %c0_i32, %arg0 : i32, i32
  }
}

</mosaic_0001>

<bundles_post_ra>
// kernel: lipmlp_forward.1
= control target key start
LH: loop header
LB: loop body
LE: loop exit
PB: predicated region body
PF: predicated region fallthrough
CT: control target
= control target key end

     0   :  { %vm59_vm0 = vcmask 1043456   ;;  %vm46_vm1 = vcmask 31744   ;;  %v510_v3 = vmov 0   ;;  %vm181_vm2 = vcmask 261120   ;;  %s617_s0 = inlined_call_operand.vmem [shape: f32[4,128], index: 0, kind: input, shape index: {}]   ;;  %s618_s1 = inlined_call_operand.vmem [shape: f32[32,4], index: 1, kind: input, shape index: {}]   ;;  %s619_s3 = inlined_call_operand.vmem [shape: f32[3,32,1], index: 3, kind: input, shape index: {}]   ;;  %s620_s2 = inlined_call_operand.vmem [shape: f32[2,32,32], index: 2, kind: input, shape index: {}]   ;;  %s621_s4 = inlined_call_operand.vmem [shape: f32[8,128], index: 4, kind: output, shape index: {}]  }
   0x1   :  { %v21_v0 = vld [vmem:[%s617_s0] sm:$0xf]  ;;  %v18_v2 = vld [vmem:[%s618_s1 + $0x8] sm:$0xff]  ;;  %508 = vset.pattern.permute.xlu0 %v510_v3  ;;  %509 = vset.pattern.permute.xlu1 %v510_v3  ;;  %v19_v4 = vld [vmem:[%s618_s1 + $0x10] sm:$0xff] }
   0x2   :  { %v17_v1 = vld [vmem:[%s618_s1] sm:$0xff]  ;;  %455 = vmatprep.subr.msk.mxu0 %vm59_vm0, %v21_v0  ;;  %v24_v6 = vld [vmem:[%s619_s3 + $0x10] sm:$0xff]  ;;  %v23_v7 = vld [vmem:[%s619_s3 + $0x8] sm:$0xff] }
   0x3   :  { %457 = vmatprep.mubr.msk.f32.mxu0 %vm46_vm1, %v17_v1  ;;  %v22_v5 = vld [vmem:[%s619_s3] sm:$0xff]  ;;  %456 = vmatpush3.msk.msra.mxu0 %vm59_vm0, %v21_v0  ;;  %v20_v8 = vld [vmem:[%s618_s1 + $0x18] sm:$0xff]  ;;  %v415_v11 = vld [vmem:[%s619_s3 + $0x28] sm:$0xff] }
   0x4   :  { %28 = vperm.xlu0 %508, %v22_v5   ;;  %458 = vmatmul.mubr.msk.f32.vlgmr.msra.gmra.mrb[0].mxu0 %vm46_vm1, %v18_v2  ;;  %v25_v9 = vld [vmem:[%s619_s3 + $0x18] sm:$0xff]  ;;  %v414_v10 = vld [vmem:[%s619_s3 + $0x20] sm:$0xff]  ;;  %v416_v12 = vld [vmem:[%s619_s3 + $0x30] sm:$0xff] }
   0x5   :  { %38 = vperm.xlu1 %509, %v24_v6   ;;  %460 = vmatprep.mubr.msk.f32.mxu0 %vm46_vm1, %v19_v4  ;;  %v417_v13 = vld [vmem:[%s619_s3 + $0x38] sm:$0xff]  ;;  %v426_v14 = vld [vmem:[%s619_s3 + $0x40] sm:$0xff]  ;;  %v153_v34 = vld [vmem:[%s620_s2 + $0x8] sm:$0xff] }
   0x6   :  { %v152_v15 = vld [vmem:[%s620_s2] sm:$0xff]  ;;  %v154_v35 = vld [vmem:[%s620_s2 + $0x10] sm:$0xff]  ;;  %v155_v36 = vld [vmem:[%s620_s2 + $0x18] sm:$0xff] }
   0x7   :  { %471 = vmatprep.mubr.msk.f32.mxu1 %vm181_vm2, %v152_v15  ;;  %v422_v37 = vld [vmem:[%s620_s2 + $0x20] sm:$0xff]  ;;  %v423_v56 = vld [vmem:[%s620_s2 + $0x28] sm:$0xff]  ;;  %v424_v57 = vld [vmem:[%s620_s2 + $0x30] sm:$0xff] }
   0x8   :  { %33 = vperm.xlu0 %508, %v23_v7   ;;  %461 = vmatmul.mubr.msk.f32.gmra.mrb[2].mxu0 %vm46_vm1, %v20_v8  ;;  %v425_v58 = vld [vmem:[%s620_s2 + $0x38] sm:$0xff] }
   0x9   :  { %43 = vperm.xlu1 %509, %v25_v9   ;;  %485 = vmatprep.mubr.msk.f32.mxu0 %vm181_vm2, %v422_v37 }
   0xc   :  { %163 = vperm.xlu0 %508, %v414_v10  }
   0xd   :  { %168 = vperm.xlu1 %509, %v415_v11  }
  0x10   :  { %173 = vperm.xlu0 %508, %v416_v12  }
  0x11   :  { %178 = vperm.xlu1 %509, %v417_v13  }
  0x14   :  { %295 = vperm.xlu0 %508, %v426_v14  }
  0x83   :  { %v29_v16 = vpop.permute.xlu0 %28 }
  0x84   :  { %v39_v17 = vpop.permute.xlu1 %38 }
  0x87   :  { %v34_v18 = vpop.permute.xlu0 %33 }
  0x88   :  { %v44_v24 = vpop.permute.xlu1 %43 }
  0x8b   :  { %v164_v39 = vpop.permute.xlu0 %163 }
  0x8c   :  { %v169_v38 = vpop.permute.xlu1 %168 }
  0x8f   :  { %v174_v48 = vpop.permute.xlu0 %173 }
  0x90   :  { %v179_v45 = vpop.permute.xlu1 %178 }
  0x93   :  { %v296_v60 = vpop.permute.xlu0 %295 }
  0xd7   :  { %v459_v19 = vpop.f32.mrb[0].mxu0 }
  0xd8   :  { %v135_v20 = vadd.f32 %v459_v19, %v34_v18  ;;  %v129_v21 = vpop.f32.mrb[1].mxu0 }
  0xd9   :  { %v130_v22 = vadd.f32 %v129_v21, %v29_v16 }
  0xda   :  { %v149_v23 = vmax.f32 %v135_v20, 0.0 }
  0xdb   :  { %v148_v25 = vmax.f32 %v130_v22, 0.0  ;;  %v462_v26 = vpop.f32.mrb[2].mxu0 }
  0xdc   :  { %v145_v27 = vadd.f32 %v462_v26, %v44_v24  ;;  %v139_v28 = vpop.f32.mrb[3].mxu0 }
  0xdd   :  { %v140_v29 = vadd.f32 %v139_v28, %v39_v17  ;;  %v491_v30 = vpack.c.bf16 %v149_v23, %v148_v25 }
  0xde   :  { %v151_v31 = vmax.f32 %v145_v27, 0.0 }
  0xdf   :  { %v150_v32 = vmax.f32 %v140_v29, 0.0  ;;  %492 = vmatprep.subr.bf16.mxu1 %v491_v30 }
  0xe0   :  { %494 = vmatpush3.bf16.msra.mxu1 %v491_v30 }
  0xe1   :  { %v495_v33 = vpack.c.bf16 %v151_v31, %v150_v32 }
  0xe3   :  { %496 = vmatprep.subr.bf16.mxu1 %v495_v33 }
  0xe4   :  { %498 = vmatpush3.bf16.msra.mxu1 %v495_v33 }
  0xe7   :  { %472 = vmatmul.mubr.msk.f32.vlgmr.msra.gmra.mrb[0].mxu1 %vm181_vm2, %v153_v34 }
  0xe8   :  { %474 = vmatprep.mubr.msk.f32.mxu1 %vm181_vm2, %v154_v35 }
  0xeb   :  { %475 = vmatmul.mubr.msk.f32.gmra.mrb[2].mxu1 %vm181_vm2, %v155_v36 }
 0x1ba   :  { %v473_v40 = vpop.f32.mrb[0].mxu1 }
 0x1bb   :  { %v266_v41 = vadd.f32 %v473_v40, %v169_v38  ;;  %v260_v42 = vpop.f32.mrb[1].mxu1 }
 0x1bc   :  { %v261_v43 = vadd.f32 %v260_v42, %v164_v39 }
 0x1bd   :  { %v280_v44 = vmax.f32 %v266_v41, 0.0 }
 0x1be   :  { %v279_v46 = vmax.f32 %v261_v43, 0.0  ;;  %v476_v47 = vpop.f32.mrb[2].mxu1 }
 0x1bf   :  { %v276_v49 = vadd.f32 %v476_v47, %v179_v45  ;;  %v270_v50 = vpop.f32.mrb[3].mxu1 }
 0x1c0   :  { %v499_v51 = vpack.c.bf16 %v280_v44, %v279_v46  ;;  %v271_v52 = vadd.f32 %v270_v50, %v174_v48 }
 0x1c1   :  { %v282_v53 = vmax.f32 %v276_v49, 0.0 }
 0x1c2   :  { %v281_v54 = vmax.f32 %v271_v52, 0.0  ;;  %500 = vmatprep.subr.bf16.mxu0 %v499_v51 }
 0x1c3   :  { %502 = vmatpush3.bf16.msra.mxu0 %v499_v51 }
 0x1c4   :  { %v503_v55 = vpack.c.bf16 %v282_v53, %v281_v54 }
 0x1c6   :  { %504 = vmatprep.subr.bf16.mxu0 %v503_v55 }
 0x1c7   :  { %506 = vmatpush3.bf16.msra.mxu0 %v503_v55 }
 0x1ca   :  { %486 = vmatmul.mubr.msk.f32.vlgmr.msra.gmra.mrb[4].mxu0 %vm181_vm2, %v423_v56 }
 0x1cb   :  { %488 = vmatprep.mubr.msk.f32.mxu0 %vm181_vm2, %v424_v57 }
 0x1ce   :  { %489 = vmatmul.mubr.msk.f32.gmra.mrb[6].mxu0 %vm181_vm2, %v425_v58 }
 0x29d   :  { %v487_v59 = vpop.f32.mrb[4].mxu0 }
 0x29e   :  { %v388_v61 = vpop.f32.mrb[5].mxu0 }
 0x29f   :  { %v389_v62 = vadd.f32 %v388_v61, %v296_v60 }
 0x2a1   :  { %404 = vst [vmem:[%s621_s4] sm:$0xff] %v389_v62  ;;  %v490_v63 = vpop.f32.mrb[6].mxu0 }
 0x2a2   :  { %v397_v0 = vpop.f32.mrb[7].mxu0 }

</bundles_post_ra>
